<compile_context>
chip_gen: v5e
topology: v5e:2x2
jax: 0.10.0
libtpu: 0.0.40
codegen_flags: <defaults>
</compile_context>

<pallas_src>
import functools

import jax
import jax.numpy as jnp
from jax.experimental import pallas as pl
from jax.experimental.pallas import tpu as pltpu


_NEG_SLOPE = 0.01  # F.leaky_relu default


def _leaky_relu(x):
    return jnp.where(x >= 0, x, _NEG_SLOPE * x)


def _round_up(v, m):
    return ((v + m - 1) // m) * m


def _sublane(dtype):
    # Minimum second-to-last tile dim: 8 (f32), 16 (bf16), 32 (int8/fp8).
    return max(8, 32 // jnp.dtype(dtype).itemsize)


def _vmem_capacity_bytes():
    try:
        return int(pltpu.get_tpu_info().vmem_capacity_bytes)
    except Exception:
        return 64 << 20  # conservative: assume v7x-class per-core VMEM


# --------------------------------------------------------------------------- #
# Kernels
# --------------------------------------------------------------------------- #
def _mlp_fused_kernel(x_ref, w1_ref, b1_ref, w2_ref, b2_ref, o_ref):
    """Whole-H fused path: weights VMEM-resident (constant block index)."""
    x = x_ref[...]                                                     # (tn, D_in)
    h = jnp.dot(x, w1_ref[...], preferred_element_type=jnp.float32)   # f32 acc
    h = _leaky_relu(h + b1_ref[...])                                   # f32 epilogue
    y = jnp.dot(h.astype(w2_ref.dtype), w2_ref[...],
                preferred_element_type=jnp.float32)
    y = _leaky_relu(y + b2_ref[...])
    o_ref[...] = y.astype(o_ref.dtype)


def _mlp_hsplit_kernel(x_ref, w1_ref, b1_ref, w2_ref, b2_ref, o_ref, acc_ref):
    """Hidden-dim (H) reduction path: stream H-slices of w1/w2, f32 accumulator."""
    j = pl.program_id(1)

    @pl.when(j == 0)
    def _():
        acc_ref[...] = jnp.zeros_like(acc_ref)

    h = jnp.dot(x_ref[...], w1_ref[...], preferred_element_type=jnp.float32)
    h = _leaky_relu(h + b1_ref[...])                # elementwise -> valid per H-slice
    acc_ref[...] += jnp.dot(h.astype(w2_ref.dtype), w2_ref[...],
                            preferred_element_type=jnp.float32)

    @pl.when(j == pl.num_programs(1) - 1)
    def _():
        y = _leaky_relu(acc_ref[...] + b2_ref[...])
        o_ref[...] = y.astype(o_ref.dtype)


# --------------------------------------------------------------------------- #
# Wrapper
# --------------------------------------------------------------------------- #
@functools.partial(
    jax.jit,
    static_argnames=("tile_n_max", "compute_dtype", "force_hidden_split", "tile_h"))
def mlp_forward(x, w1, b1, w2, b2, *, tile_n_max=512, compute_dtype=None,
                force_hidden_split=False, tile_h=None):
    """x: (N, D_in); w1: (D_in, H); b1: (H,); w2: (H, D_out); b2: (D_out,).

    Weights are the transposed layout of PyTorch nn.Linear (.weight.T).
    compute_dtype=jnp.bfloat16 enables the fast MXU path (f32 accumulation and
    f32 bias/leaky-relu epilogue are kept); default None is the exact f32 path.
    """
    out_dtype = x.dtype
    if compute_dtype is not None:
        # bf16 fast path: halves streamed HBM bytes for x/w and runs the MXU at
        # full rate on v6e/v7x (and the bf16 MXU on v5e).
        x = x.astype(compute_dtype)
        w1 = w1.astype(compute_dtype)
        w2 = w2.astype(compute_dtype)

    N, D_in = x.shape
    H = w1.shape[1]
    D_out = w2.shape[1]

    # Biases as (1, D) f32 rows so the epilogue stays f32 regardless of inputs.
    b1_2d = b1.reshape(1, H).astype(jnp.float32)
    b2_2d = b2.reshape(1, D_out).astype(jnp.float32)

    sub = _sublane(x.dtype)
    itm_x = jnp.dtype(x.dtype).itemsize
    itm_w = jnp.dtype(w1.dtype).itemsize
    itm_o = jnp.dtype(out_dtype).itemsize

    # ------------------ batch tile selection (no N padding) ------------------ #
    tile_n_cap = max(sub, (tile_n_max // sub) * sub)
    if N > tile_n_cap:
        tile_n = tile_n_cap                              # streaming regime
    elif N >= 2 * sub:
        # Split into >=2 sublane-aligned tiles so both v7x TensorCores get work
        # and input DMA overlaps compute even for mid-sized N.
        tile_n = min(tile_n_cap, _round_up(pl.cdiv(N, 2), sub))
    else:
        tile_n = N                                       # tiny batch: one exact tile

    # ------------------ generation-aware VMEM budget ------------------------- #
    cap = _vmem_capacity_bytes()
    budget = max(24 << 20, cap - (16 << 20))             # headroom for Mosaic internals

    def fused_vmem(tn):
        # Weights/biases are (conservatively) counted double-buffered; x/out
        # tiles are double-buffered; f32 intermediates for h and y.
        w_bytes = 2 * ((D_in * H + H * D_out) * itm_w + (H + D_out) * 4)
        io_bytes = 2 * tn * D_in * itm_x + 2 * tn * D_out * itm_o
        tmp_bytes = tn * (H + D_out) * 4
        return w_bytes + io_bytes + tmp_bytes

    use_split = bool(force_hidden_split)
    if not use_split:
        # Prefer shrinking the batch tile (down to 128 rows) before giving up
        # on the whole-H fused path.
        while fused_vmem(tile_n) > budget and tile_n > max(sub, 128):
            tile_n = max(max(sub, 128), _round_up(tile_n // 2, sub))
        use_split = fused_vmem(tile_n) > budget

    # ======================= Path A: whole-H fused =========================== #
    if not use_split:
        grid = (pl.cdiv(N, tile_n),)
        vmem_limit = int(min(budget,
                             max(32 << 20, fused_vmem(tile_n) * 1.5 + (4 << 20))))
        cost = pl.CostEstimate(
            flops=2 * N * (D_in * H + H * D_out),
            transcendentals=0,
            bytes_accessed=(N * D_in * itm_x
                            + (D_in * H + H * D_out) * itm_w
                            + (H + D_out) * 4
                            + N * D_out * itm_o),
        )
        return pl.pallas_call(
            _mlp_fused_kernel,
            out_shape=jax.ShapeDtypeStruct((N, D_out), out_dtype),
            grid_spec=pltpu.PrefetchScalarGridSpec(
                num_scalar_prefetch=0,
                grid=grid,
                in_specs=[
                    pl.BlockSpec((tile_n, D_in), lambda i: (i, 0)),   # x: tiled over N
                    pl.BlockSpec((D_in, H), lambda i: (0, 0)),        # w1: resident
                    pl.BlockSpec((1, H), lambda i: (0, 0)),           # b1: resident
                    pl.BlockSpec((H, D_out), lambda i: (0, 0)),       # w2: resident
                    pl.BlockSpec((1, D_out), lambda i: (0, 0)),       # b2: resident
                ],
                out_specs=pl.BlockSpec((tile_n, D_out), lambda i: (i, 0)),
            ),
            compiler_params=pltpu.CompilerParams(
                dimension_semantics=("parallel",),     # row tiles independent
                vmem_limit_bytes=vmem_limit,
            ),
            cost_estimate=cost,
        )(x, w1, b1_2d, w2, b2_2d)

    # ================= Path B: hidden-dim (H) reduction axis ================= #
    if tile_h is None:
        for cand in (512, 256, 128):
            if H % cand == 0:
                tile_h = cand
                break
        else:
            tile_h = 128
    if tile_h % 128 != 0 and tile_h != H:
        raise ValueError("tile_h must be a multiple of 128 (or equal to H)")

    H_p = _round_up(H, tile_h)
    if H_p != H:
        # Zero-padding the hidden dim is inert: leaky_relu(0 + 0) = 0, and the
        # corresponding (zero) rows of w2 contribute nothing.
        w1 = jnp.zeros((D_in, H_p), w1.dtype).at[:, :H].set(w1)
        b1_2d = jnp.zeros((1, H_p), b1_2d.dtype).at[:, :H].set(b1_2d)
        w2 = jnp.zeros((H_p, D_out), w2.dtype).at[:H, :].set(w2)

    def split_vmem(tn, th):
        w_bytes = 2 * ((D_in * th + th * D_out) * itm_w + (th + D_out) * 4)
        io_bytes = 2 * tn * D_in * itm_x + 2 * tn * D_out * itm_o
        acc_bytes = tn * D_out * 4
        tmp_bytes = tn * th * 4
        return w_bytes + io_bytes + acc_bytes + tmp_bytes

    while split_vmem(tile_n, tile_h) > budget and tile_n > max(sub, 128):
        tile_n = max(max(sub, 128), _round_up(tile_n // 2, sub))

    grid = (pl.cdiv(N, tile_n), H_p // tile_h)
    vmem_limit = int(min(budget,
                         max(32 << 20, split_vmem(tile_n, tile_h) * 1.5 + (4 << 20))))
    cost = pl.CostEstimate(
        flops=2 * N * (D_in * H_p + H_p * D_out),
        transcendentals=0,
        bytes_accessed=(N * D_in * itm_x
                        + pl.cdiv(N, tile_n) * (D_in * H_p + H_p * D_out) * itm_w
                        + N * D_out * itm_o),
    )
    return pl.pallas_call(
        _mlp_hsplit_kernel,
        out_shape=jax.ShapeDtypeStruct((N, D_out), out_dtype),
        grid_spec=pltpu.PrefetchScalarGridSpec(
            num_scalar_prefetch=0,
            grid=grid,
            in_specs=[
                pl.BlockSpec((tile_n, D_in), lambda i, j: (i, 0)),    # x: per N-tile
                pl.BlockSpec((D_in, tile_h), lambda i, j: (0, j)),    # w1 H-slice
                pl.BlockSpec((1, tile_h), lambda i, j: (0, j)),       # b1 H-slice
                pl.BlockSpec((tile_h, D_out), lambda i, j: (j, 0)),   # w2 H-slice
                pl.BlockSpec((1, D_out), lambda i, j: (0, 0)),        # b2: resident
            ],
            out_specs=pl.BlockSpec((tile_n, D_out), lambda i, j: (i, 0)),
            scratch_shapes=[pltpu.VMEM((tile_n, D_out), jnp.float32)],
        ),
        compiler_params=pltpu.CompilerParams(
            dimension_semantics=("parallel", "arbitrary"),   # H axis is a reduction
            vmem_limit_bytes=vmem_limit,
        ),
        cost_estimate=cost,
    )(x, w1, b1_2d, w2, b2_2d)


# --------------------------------------------------------------------------- #
# Reference + tests
# --------------------------------------------------------------------------- #
def _mlp_reference(x, w1, b1, w2, b2):
    h = x @ w1 + b1
    h = jnp.where(h >= 0, h, _NEG_SLOPE * h)
    y = h @ w2 + b2
    return jnp.where(y >= 0, y, _NEG_SLOPE * y)


if __name__ == "__main__":
    key = jax.random.PRNGKey(0)
    kx, kw1, kb1, kw2, kb2 = jax.random.split(key, 5)

    # ---- Test 1: fused whole-H path, exact f32, ragged N (2 grid steps). ----
    N, D_in, H, D_out = 20, 32, 64, 16
    x = jax.random.normal(kx, (N, D_in), dtype=jnp.float32)
    w1 = jax.random.normal(kw1, (D_in, H), dtype=jnp.float32) * 0.1
    b1 = jax.random.normal(kb1, (H,), dtype=jnp.float32) * 0.1
    w2 = jax.random.normal(kw2, (H, D_out), dtype=jnp.float32) * 0.1
    b2 = jax.random.normal(kb2, (D_out,), dtype=jnp.float32) * 0.1

    out = jax.block_until_ready(mlp_forward(x, w1, b1, w2, b2))
    ref = _mlp_reference(x, w1, b1, w2, b2)
    assert out.shape == (N, D_out), f"bad output shape {out.shape}"
    assert jnp.allclose(out, ref, atol=1e-4, rtol=1e-4), "fused path mismatch"

    # ---- Test 2: forced hidden-split (reduction) path, 2 reduction steps. ----
    H2 = 256
    w1b = jax.random.normal(kw1, (D_in, H2), dtype=jnp.float32) * 0.1
    b1b = jax.random.normal(kb1, (H2,), dtype=jnp.float32) * 0.1
    w2b = jax.random.normal(kw2, (H2, D_out), dtype=jnp.float32) * 0.1
    out2 = jax.block_until_ready(
        mlp_forward(x, w1b, b1b, w2b, b2, force_hidden_split=True, tile_h=128))
    ref2 = _mlp_reference(x, w1b, b1b, w2b, b2)
    assert out2.shape == (N, D_out)
    assert jnp.allclose(out2, ref2, atol=1e-4, rtol=1e-4), "H-split path mismatch"

    # ---- Test 3: bf16 compute path (f32 accumulate + epilogue), loose tol. ----
    out3 = jax.block_until_ready(
        mlp_forward(x, w1, b1, w2, b2, compute_dtype=jnp.bfloat16))
    assert out3.dtype == x.dtype
    assert jnp.allclose(out3, ref, atol=0.1, rtol=0.1), "bf16 path mismatch"

    print("KERNEL_OK")
</pallas_src>

<mosaic_0001>
module attributes {stable_mosaic.version = 11 : i64} {
  func.func @_mlp_fused_kernel(%arg0: i32, %arg1: memref<16x32xf32, #tpu.memory_space<vmem>>, %arg2: memref<32x64xf32, #tpu.memory_space<vmem>>, %arg3: memref<1x64xf32, #tpu.memory_space<vmem>>, %arg4: memref<64x16xf32, #tpu.memory_space<vmem>>, %arg5: memref<1x16xf32, #tpu.memory_space<vmem>>, %arg6: memref<16x16xf32, #tpu.memory_space<vmem>>) attributes {dimension_semantics = [#tpu.dimension_semantics<parallel>], iteration_bounds = array<i64: 2>, scalar_prefetch = 0 : i64, scratch_operands = 0 : i64, tpu.core_type = #tpu.core_type<tc>, window_params = [{transform_indices = @transform_0, window_bounds = array<i64: 16, 32>}, {pipeline_mode = #tpu.pipeline_mode<synchronous>, transform_indices = @transform_1, window_bounds = array<i64: 32, 64>}, {pipeline_mode = #tpu.pipeline_mode<synchronous>, transform_indices = @transform_2, window_bounds = array<i64: 1, 64>}, {pipeline_mode = #tpu.pipeline_mode<synchronous>, transform_indices = @transform_3, window_bounds = array<i64: 64, 16>}, {pipeline_mode = #tpu.pipeline_mode<synchronous>, transform_indices = @transform_4, window_bounds = array<i64: 1, 16>}, {transform_indices = @transform_5, window_bounds = array<i64: 16, 16>}]} {
    %c0 = arith.constant 0 : index
    %c0_0 = arith.constant 0 : index
    %0 = vector.load %arg1[%c0, %c0_0] : memref<16x32xf32, #tpu.memory_space<vmem>>, vector<16x32xf32>
    %c0_1 = arith.constant 0 : index
    %c0_2 = arith.constant 0 : index
    %1 = vector.load %arg2[%c0_1, %c0_2] : memref<32x64xf32, #tpu.memory_space<vmem>>, vector<32x64xf32>
    %cst = arith.constant dense<0.000000e+00> : vector<16x64xf32>
    %2 = tpu.matmul %0, %1, %cst {dimension_numbers = #tpu.dot_dimension_numbers<[1], [0], [0], [1], [0, 0, 1, 1], [], []>} : vector<16x32xf32>, vector<32x64xf32>, vector<16x64xf32> -> vector<16x64xf32>
    %c0_3 = arith.constant 0 : index
    %c0_4 = arith.constant 0 : index
    %3 = vector.load %arg3[%c0_3, %c0_4] : memref<1x64xf32, #tpu.memory_space<vmem>>, vector<1x64xf32>
    %4 = vector.broadcast %3 : vector<1x64xf32> to vector<16x64xf32>
    %5 = arith.addf %2, %4 : vector<16x64xf32>
    %cst_5 = arith.constant 0.000000e+00 : f32
    %6 = vector.broadcast %cst_5 : f32 to vector<16x64xf32>
    %7 = arith.cmpf oge, %5, %6 : vector<16x64xf32>
    %cst_6 = arith.constant 0.00999999977 : f32
    %8 = vector.broadcast %cst_6 : f32 to vector<16x64xf32>
    %9 = arith.mulf %8, %5 : vector<16x64xf32>
    %10 = arith.select %7, %5, %9 : vector<16x64xi1>, vector<16x64xf32>
    %c0_7 = arith.constant 0 : index
    %c0_8 = arith.constant 0 : index
    %11 = vector.load %arg4[%c0_7, %c0_8] : memref<64x16xf32, #tpu.memory_space<vmem>>, vector<64x16xf32>
    %cst_9 = arith.constant dense<0.000000e+00> : vector<16x16xf32>
    %12 = tpu.matmul %10, %11, %cst_9 {dimension_numbers = #tpu.dot_dimension_numbers<[1], [0], [0], [1], [0, 0, 1, 1], [], []>} : vector<16x64xf32>, vector<64x16xf32>, vector<16x16xf32> -> vector<16x16xf32>
    %c0_10 = arith.constant 0 : index
    %c0_11 = arith.constant 0 : index
    %13 = vector.load %arg5[%c0_10, %c0_11] : memref<1x16xf32, #tpu.memory_space<vmem>>, vector<1x16xf32>
    %14 = vector.broadcast %13 : vector<1x16xf32> to vector<16x16xf32>
    %15 = arith.addf %12, %14 : vector<16x16xf32>
    %cst_12 = arith.constant 0.000000e+00 : f32
    %16 = vector.broadcast %cst_12 : f32 to vector<16x16xf32>
    %17 = arith.cmpf oge, %15, %16 : vector<16x16xf32>
    %cst_13 = arith.constant 0.00999999977 : f32
    %18 = vector.broadcast %cst_13 : f32 to vector<16x16xf32>
    %19 = arith.mulf %18, %15 : vector<16x16xf32>
    %20 = arith.select %17, %15, %19 : vector<16x16xi1>, vector<16x16xf32>
    %c0_14 = arith.constant 0 : index
    %c0_15 = arith.constant 0 : index
    %21 = vector.load %arg6[%c0_14, %c0_15] : memref<16x16xf32, #tpu.memory_space<vmem>>, vector<16x16xf32>
    tpu.vector_store %arg6[%c0_14, %c0_15], %20 {strides = array<i32>} : memref<16x16xf32, #tpu.memory_space<vmem>>, vector<16x16xf32>,
    return
  }
  func.func @transform_0(%arg0: i32) -> (i32, i32) {
    %c0_i32 = arith.constant 0 : i32
    %c0_i32_0 = arith.constant 0 : i32
    return %arg0, %c0_i32 : i32, i32
  }
  func.func @transform_1(%arg0: i32) -> (i32, i32) {
    %c0_i32 = arith.constant 0 : i32
    %c0_i32_0 = arith.constant 0 : i32
    %c0_i32_1 = arith.constant 0 : i32
    return %c0_i32, %c0_i32_0 : i32, i32
  }
  func.func @transform_2(%arg0: i32) -> (i32, i32) {
    %c0_i32 = arith.constant 0 : i32
    %c0_i32_0 = arith.constant 0 : i32
    %c0_i32_1 = arith.constant 0 : i32
    return %c0_i32, %c0_i32_0 : i32, i32
  }
  func.func @transform_3(%arg0: i32) -> (i32, i32) {
    %c0_i32 = arith.constant 0 : i32
    %c0_i32_0 = arith.constant 0 : i32
    %c0_i32_1 = arith.constant 0 : i32
    return %c0_i32, %c0_i32_0 : i32, i32
  }
  func.func @transform_4(%arg0: i32) -> (i32, i32) {
    %c0_i32 = arith.constant 0 : i32
    %c0_i32_0 = arith.constant 0 : i32
    %c0_i32_1 = arith.constant 0 : i32
    return %c0_i32, %c0_i32_0 : i32, i32
  }
  func.func @transform_5(%arg0: i32) -> (i32, i32) {
    %c0_i32 = arith.constant 0 : i32
    %c0_i32_0 = arith.constant 0 : i32
    return %arg0, %c0_i32 : i32, i32
  }
}

</mosaic_0001>

<bundles_post_ra>
// kernel: mlp_forward.1
= control target key start
LH: loop header
LB: loop body
LE: loop exit
PB: predicated region body
PF: predicated region fallthrough
CT: control target
= control target key end

     0   :  { %s814_s18 = smov 0   ;;  %s816_s19 = smov 0   ;;  %s939_s0 = inlined_call_operand.vmem [shape: f32[20,32], index: 0, kind: input, shape index: {}]   ;;  %s940_s1 = inlined_call_operand.vmem [shape: f32[32,64], index: 1, kind: input, shape index: {}]   ;;  %s941_s2 = inlined_call_operand.vmem [shape: f32[1,64], index: 2, kind: input, shape index: {}]   ;;  %s942_s3 = inlined_call_operand.vmem [shape: f32[64,16], index: 3, kind: input, shape index: {}]   ;;  %s943_s4 = inlined_call_operand.vmem [shape: f32[1,16], index: 4, kind: input, shape index: {}]   ;;  %s944_s5 = inlined_call_operand.vmem [shape: f32[20,16], index: 5, kind: output, shape index: {}]  }
   0x1   :  { %s818_s20 = smov 0  }
   0x2 LB: > { %s827_s21 = sadd.s32 4294967295, %s750_s20   ;;  %s829_s22 = sadd.s32 1, %s750_s20   ;;  %s750_s20 = sphi %s818_s20, %s948_s20   ;;  %s746_s19 = sphi %s816_s19, %s947_s19   ;;  %s742_s18 = sphi %s814_s18, %s946_s18  }
   0x3   : > { %s129_s23 = ssub.s32 %s750_s20, %s829_s22  ;;  %s132_s24 = sadd.s32 1, %s746_s19 }
   0x4   : > { %p130_p0 = scmp.eq.s32.totalorder %s129_s23, 0  ;;  %p142_p1 = scmp.ne.s32.totalorder %s746_s19, %s742_s18 }
   0x5   : > { %p143_p2 = scmp.eq.s32.totalorder %s827_s21, 1  ;;  %p566_p3 = scmp.ge.s32.totalorder %s750_s20, 1 }
   0x6   : > { %s837_s25 = scalar_select %p130_p0, %s746_s19, %s132_s24  }
   0x7   : > { %p839_p4 = por %p143_p2, %p142_p1  ;;  %p196_p5 = scmp.lt.s32.totalorder %s750_s20, 3 }
   0x9   : > { %p197_p6 = pnand %p566_p3, %p196_p5 }
   0xa   : > { %s850_s6 = sshll.u32 (!%p197_p6), %s827_s21, 1  ;;  %s224_s16 = sand.u32 (!%p197_p6), 1, %s742_s18  }
   0xb   : > { %200 = sbr.rel (%p197_p6) target bundleno = 338 (0x152), region = 40  ;;  %p232_p7 = scmp.lt.s32.totalorder (!%p197_p6), %s850_s6, 2 }
   0xc   : > { %s567_s23 = sshll.u32 (!%p197_p6), %s224_s16, 4 }
   0xd   : > { %s894_s24 = scalar_lea.vmem (!%p197_p6), [#allocation2], %s567_s23  }
  0x10   : > { %v251_v0 = vld [vmem:[%s940_s1 + $0x18] sm:$0xff]  ;;  %v250_v1 = vld [vmem:[%s940_s1 + $0x10] sm:$0xff]  ;;  %v249_v4 = vld [vmem:[%s940_s1 + $0x8] sm:$0xff]  ;;  %s233_s13 = scalar_select %p232_p7, %s850_s6, 2  ;;  %vm256_vm0 = vcmask 261120   ;;  %vm304_vm2 = vcmask 523264  }
  0x11   : > { %594 = vmatpush.msra.mxu3 %v251_v0  ;;  %275 = vmatpush.msra.mxu0 %v251_v0  ;;  %v299_v2 = vld [vmem:[%s942_s3 + $0x38] sm:$0xff]  ;;  %v298_v3 = vld [vmem:[%s942_s3 + $0x30] sm:$0xff]  ;;  %v297_v5 = vld [vmem:[%s942_s3 + $0x28] sm:$0xff]  ;;  %vm340_vm5 = vcmask 130048   ;;  %s351_s18 = ssub.s32 (%p839_p4), 3, %s850_s6 }
  0x12   : > { %598 = vmatpush.msra.mxu2 %v299_v2  ;;  %319 = vmatpush.msra.mxu1 %v299_v2  ;;  %v248_v6 = vld [vmem:[%s940_s1] sm:$0xff]  ;;  %s569_s20 = sshll.u32 %s233_s13, 3  ;;  %v295_v10 = vld [vmem:[%s942_s3 + $0x18] sm:$0xff]  ;;  %v294_v11 = vld [vmem:[%s942_s3 + $0x10] sm:$0xff]  ;;  %p352_p8 = scmp.lt.s32.totalorder (%p839_p4), %s351_s18, 2 }
  0x13   : > { %595 = vmatpush.msra.mxu3 %v250_v1  ;;  %276 = vmatpush.msra.mxu0 %v250_v1  ;;  %s235_s27 = scalar_lea.vmem %s939_s0, %s569_s20  ;;  %v296_v7 = vld [vmem:[%s942_s3 + $0x20] sm:$0xff]  ;;  %v293_v12 = vld [vmem:[%s942_s3 + $0x8] sm:$0xff] }
  0x14   : > { %599 = vmatpush.msra.mxu2 %v298_v3  ;;  %320 = vmatpush.msra.mxu1 %v298_v3  ;;  %v247_v8 = vld [vmem:[%s235_s27 + $0x8] sm:$0xff]  ;;  %v246_v9 = vld [vmem:[%s235_s27] sm:$0xff]  ;;  %s591_s27 = sshll.u32 (%p839_p4), %s827_s21, 4 }
  0x15   : > { %596 = vmatpush.msra.mxu3 %v249_v4  ;;  %277 = vmatpush.msra.mxu0 %v249_v4  ;;  %v292_v13 = vld [vmem:[%s942_s3] sm:$0xff]  ;;  %s905_s30 = scalar_lea.vmem (%p839_p4), %s944_s5, %s591_s27  }
  0x16   : > { %600 = vmatpush.msra.mxu2 %v297_v5  ;;  %321 = vmatpush.msra.mxu1 %v297_v5  ;;  %v694_v14 = vld [vmem:[%s941_s2] ss:$0 sm:$0xff] }
  0x17   : > { %597 = vmatpush.msra.mxu3 %v248_v6  ;;  %278 = vmatpush.msra.mxu0 %v248_v6  ;;  %v695_v23 = vld [vmem:[%s943_s4] ss:$0 sm:$0xff] }
  0x18   : > { %571 = vmatmul.msk.f32.vlgmr.msra.gmra.mxu3 %vm256_vm0, %v247_v8  ;;  %570 = vmatmul.msk.f32.vlgmr.msra.gmra.mxu0 %vm256_vm0, %v246_v9 }
  0x19   : > { %601 = vmatpush.msra.mxu2 %v296_v7  ;;  %322 = vmatpush.msra.mxu1 %v296_v7 }
  0x1b   : > { %602 = vmatpush.msra.mxu2 %v295_v10  ;;  %323 = vmatpush.msra.mxu1 %v295_v10 }
  0x1d   : > { %603 = vmatpush.msra.mxu2 %v294_v11  ;;  %324 = vmatpush.msra.mxu1 %v294_v11 }
  0x1f   : > { %604 = vmatpush.msra.mxu2 %v293_v12  ;;  %325 = vmatpush.msra.mxu1 %v293_v12 }
  0x21   : > { %605 = vmatpush.msra.mxu2 %v292_v13  ;;  %326 = vmatpush.msra.mxu1 %v292_v13 }
  0x95   : > { %v280_v15 = vpop.f32.mrf.mxu0 }
  0x96   : > { %v281_v16 = vadd.f32 %v694_v14, %v280_v15 }
  0x98   : > { %v288_v17 = vmul.f32 0.01, %v281_v16  ;;  %vm286_vm1 = vcmp.ge.f32.partialorder %v281_v16, 0.0 }
  0x9a   : > { %v290_v18 = vsel %vm286_vm1, %v281_v16, %v288_v17 }
  0x9b   : > { %v283_v19 = vpop.f32.mrf.mxu3  ;;  %572 = vmatmul.msk.f32.vlgmr.msra.gmra.mxu1 %vm304_vm2, %v290_v18 }
  0x9c   : > { %v284_v20 = vadd.f32 %v694_v14, %v283_v19 }
  0x9e   : > { %v289_v21 = vmul.f32 0.01, %v284_v20  ;;  %vm287_vm3 = vcmp.ge.f32.partialorder %v284_v20, 0.0 }
  0xa0   : > { %v291_v22 = vsel %vm287_vm3, %v284_v20, %v289_v21 }
  0xa1   : > { %573 = vmatmul.msk.f32.vlgmr.msra.gmra.mxu2 %vm304_vm2, %v291_v22 }
 0x118   : > { %v328_v24 = vpop.f32.mrf.mxu1 }
 0x119   : > { %v329_v25 = vadd.f32 %v695_v23, %v328_v24 }
 0x11b   : > { %vm334_vm4 = vcmp.ge.f32.partialorder %v329_v25, 0.0  ;;  %v336_v26 = vmul.f32 0.01, %v329_v25 }
 0x11d   : > { %v338_v27 = vsel %vm334_vm4, %v329_v25, %v336_v26 }
 0x11e   : > { %341 = vst.msk [vmem:[%s894_s24] sm:$0xff] %vm340_vm5, %v338_v27 }
 0x124   : > { %v331_v28 = vpop.f32.mrf.mxu2 }
 0x125   : > { %v332_v29 = vadd.f32 %v695_v23, %v331_v28 }
 0x126   : > { %349 = sbr.rel (!%p839_p4) target bundleno = 338 (0x152), region = 44 }
 0x127   : > { %vm335_vm6 = vcmp.ge.f32.partialorder %v332_v29, 0.0  ;;  %v337_v30 = vmul.f32 0.01, %v332_v29 }
 0x129   : > { %v339_v31 = vsel %vm335_vm6, %v332_v29, %v337_v30 }
 0x12a   : > { %342 = vst.msk [vmem:[%s894_s24 + $0x8] sm:$0xff] %vm340_vm5, %v339_v31 }
 0x12b   : > { %s950_s18 = smov (!%p352_p8, %s351_s18), 2 }
 0x12c   : > { %s576_s7 = sshll.u32 %s950_s18, 3 }
 0x12d   : > { %p579_p9 = scmp.eq.s32.totalorder %s576_s7, 0 }
 0x12e   : > { %s911_s8 = sshrl.u32 (!%p579_p9), %s950_s18, 1 }
 0x12f   : > { %360 = sbr.rel (%p579_p9) target bundleno = 338 (0x152), region = 48  ;;  %p580_p10 = scmp.le.s32.totalorder (!%p579_p9), %s911_s8, 0 }
 0x134   : > { %519 = sbr.rel (%p580_p10) target bundleno = 321 (0x141), region = 124  ;;  %s752_s21 = smov (!%p580_p10), %s905_s30  }
 0x135   : > { %s756_s26 = smov (!%p580_p10), %s894_s24   ;;  %s760_s6 = smov (!%p580_p10), 0  }
 0x136   : > { %s764_s9 = smov (!%p580_p10), 0  }
 0x139 LB: >> { %v425_v32 = vld [vmem:[%s758_s26] sm:$0xff]  ;;  %v427_v33 = vld [vmem:[%s758_s26 + $0x8] sm:$0xff]  ;;  %s429_s10 = sadd.s32 1, %s762_s6  ;;  %s419_s9 = sadd.s32 1, %s766_s9   ;;  %s766_s9 = sphi %s764_s9, %s419_s9   ;;  %s762_s6 = sphi %s760_s6, %s761_s6   ;;  %s758_s26 = sphi %s756_s26, %s434_s26   ;;  %s754_s21 = sphi %s752_s21, %s435_s21  }
 0x13a   : >> { %426 = vst [vmem:[%s754_s21] sm:$0xff] %v425_v32  ;;  %p430_p11 = scmp.ge.s32.totalorder %s429_s10, %s911_s8  ;;  %p418_p12 = scmp.ge.s32.totalorder %s419_s9, %s911_s8 }
 0x13b   : >> { %428 = vst [vmem:[%s754_s21 + $0x8] sm:$0xff] %v427_v33 }
 0x13c   : >> { %s952_s10 = smov (%p430_p11, %s429_s10), 0  ;;  %421 = sbr.rel (!%p418_p12) target bundleno = 313 (0x139), region = 130 }
 0x13d   : >> { %s581_s11 = sshll.u32 %s952_s10, 4  ;;  %s761_s6 = smov %s952_s10  }
 0x13e   : >> { %s434_s26 = scalar_lea.vmem %s894_s24, %s581_s11 [#allocation2]   ;;  %s435_s21 = scalar_lea.vmem %s905_s30, %s581_s11  }
 0x141 PF: > { %s921_s12 = sand.u32 1, %s950_s18   ;;  %s592_s13 = sshll.u32 %s911_s8, 4 }
 0x142   : > { %s440_s14 = scalar_lea.vmem %s894_s24, %s592_s13 [#allocation2]   ;;  %s442_s15 = scalar_lea.vmem %s905_s30, %s592_s13  }
 0x143   : > { %p586_p13 = scmp.le.s32.totalorder %s921_s12, 0 }
 0x144   : > { %s768_s16 = smov (!%p586_p13), %s442_s15   ;;  %s772_s17 = smov (!%p586_p13), %s440_s14  }
 0x145   : > { %533 = sbr.rel (%p586_p13) target bundleno = 338 (0x152), region = 135  ;;  %s776_s20 = smov (!%p586_p13), 0  }
 0x146   : > { %s780_s23 = smov (!%p586_p13), 0  }
 0x14a LB: >> { %v452_v34 = vld [vmem:[%s774_s17] sm:$0xff]  ;;  %s454_s18 = sadd.s32 1, %s778_s20  ;;  %s446_s23 = sadd.s32 1, %s782_s23   ;;  %s782_s23 = sphi %s780_s23, %s446_s23   ;;  %s778_s20 = sphi %s776_s20, %s777_s20   ;;  %s774_s17 = sphi %s772_s17, %s459_s17   ;;  %s770_s16 = sphi %s768_s16, %s460_s16  }
 0x14b   : >> { %453 = vst [vmem:[%s770_s16] sm:$0xff] %v452_v34  ;;  %p455_p0 = scmp.ge.s32.totalorder %s454_s18, %s921_s12  ;;  %p445_p1 = scmp.ge.s32.totalorder %s446_s23, %s921_s12 }
 0x14d   : >> { %s954_s18 = smov (%p455_p0, %s454_s18), 0  ;;  %448 = sbr.rel (!%p445_p1) target bundleno = 330 (0x14a), region = 141 }
 0x14e   : >> { %s587_s24 = sshll.u32 %s954_s18, 3  ;;  %s777_s20 = smov %s954_s18  }
 0x14f   : >> { %s459_s17 = scalar_lea.vmem %s440_s14, %s587_s24 [#allocation2]   ;;  %s460_s16 = scalar_lea.vmem %s442_s15, %s587_s24  }
 0x152 PF: > { %p12_p2 = scmp.ge.s32.totalorder %s829_s22, 4   ;;  %s946_s18 = smov %s746_s19 }
 0x153   : > { %s947_s19 = smov %s837_s25  ;;  %s948_s20 = smov %s829_s22 }
 0x154   :  { %14 = sbr.rel (!%p12_p2) target bundleno = 2 (0x2), region = 152 }

</bundles_post_ra>
